<compile_context>
chip_gen: v7x
topology: tpu7x:2x2x1
jax: 0.10.0
libtpu: 0.0.40
codegen_flags: <defaults>
</compile_context>

<pallas_src>
import functools

import jax
import jax.numpy as jnp
from jax.experimental import pallas as pl
from jax.experimental.pallas import tpu as pltpu


# ----------------------------------------------------------------------------
# Pallas kernel: (tm, K) @ (K, tn) MXU matmul + folded BN + residual + ReLU
# ----------------------------------------------------------------------------
def _make_matmul_epilogue_kernel(relu, has_res):
    def kernel(lhs_ref, rhs_ref, scale_ref, bias_ref, *rest):
        if has_res:
            res_ref, out_ref = rest
        else:
            (out_ref,) = rest
        # Single MXU contraction over the folded K = kh*kw*Cin (bf16 in, f32 acc).
        acc = jnp.dot(lhs_ref[...], rhs_ref[...],
                      preferred_element_type=jnp.float32)
        out = acc * scale_ref[...] + bias_ref[...]      # folded eval-mode BN
        if has_res:
            out = out + res_ref[...].astype(jnp.float32)
        if relu:
            out = jnp.maximum(out, 0.0)
        out_ref[...] = out.astype(out_ref.dtype)
    return kernel


@functools.lru_cache(maxsize=None)
def _vmem_limit_bytes():
    # ~3/4 of physical VMEM: ~96 MiB on v5e/v6e (128 MiB phys), ~48 MiB on v7x
    # (64 MiB phys).  Falls back to a value that is safe on every generation.
    try:
        cap = int(pltpu.get_tpu_info().vmem_capacity_bytes)
    except Exception:
        return 48 * 1024 * 1024
    return max(32 * 1024 * 1024, min(cap * 3 // 4, 112 * 1024 * 1024))


def _pick_m_tile(m):
    """Largest power-of-two tile that divides M and leaves >= 2 tiles."""
    for t in (512, 256, 128, 64, 32, 16, 8):
        if m % t == 0 and m // t >= 2:
            return t
    return m


def _pick_n_tile(cout):
    if cout % 256 == 0:            # v6e/v7x MXU is 256-wide
        return 256
    if cout % 128 == 0:
        return 128
    return cout                    # small Cout: full (lane-padded) dim


def _matmul_bn_act(patches, w2d, scale, bias, residual, relu):
    """patches: (M, K) bf16, w2d: (K, Cout) bf16, scale/bias: (1, Cout) f32."""
    m, k = patches.shape
    cout = w2d.shape[1]
    tm = _pick_m_tile(m)
    tn = _pick_n_tile(cout)
    grid = (m // tm, cout // tn)
    has_res = residual is not None

    in_specs = [
        pl.BlockSpec((tm, k), lambda i, j: (i, 0)),     # LHS: full folded K
        pl.BlockSpec((k, tn), lambda i, j: (0, j)),     # RHS weight tile
        pl.BlockSpec((1, tn), lambda i, j: (0, j)),     # BN scale
        pl.BlockSpec((1, tn), lambda i, j: (0, j)),     # BN bias
    ]
    args = [patches, w2d, scale, bias]
    if has_res:
        in_specs.append(pl.BlockSpec((tm, tn), lambda i, j: (i, j)))
        args.append(residual)

    call = pl.pallas_call(
        _make_matmul_epilogue_kernel(bool(relu), has_res),
        out_shape=jax.ShapeDtypeStruct((m, cout), jnp.float32),
        grid=grid,
        in_specs=in_specs,
        out_specs=pl.BlockSpec((tm, tn), lambda i, j: (i, j)),
        compiler_params=pltpu.CompilerParams(
            dimension_semantics=("parallel", "parallel"),
            vmem_limit_bytes=_vmem_limit_bytes(),
        ),
    )
    return call(*args)


# ----------------------------------------------------------------------------
# im2col glue (plain JAX): fold kh*kw taps + Cin onto the lane/contraction dim,
# applying stride / dilation / zero-padding in the gather.
# ----------------------------------------------------------------------------
def _im2col(x, kh, kw, stride, dilation, padding):
    """x: (N, H, W, Cin) f32 -> ((N*Ho*Wo, kh*kw*Cin) bf16, (N, Ho, Wo))."""
    x = x.astype(jnp.bfloat16)
    n, h, w, cin = x.shape
    if padding > 0:
        x = jnp.pad(x, ((0, 0), (padding, padding), (padding, padding), (0, 0)))
    hp, wp = h + 2 * padding, w + 2 * padding
    ho = (hp - dilation * (kh - 1) - 1) // stride + 1
    wo = (wp - dilation * (kw - 1) - 1) // stride + 1
    cols = []
    for i in range(kh):
        for j in range(kw):
            hi, wj = i * dilation, j * dilation
            cols.append(x[:, hi:hi + (ho - 1) * stride + 1:stride,
                          wj:wj + (wo - 1) * stride + 1:stride, :])
    patches = cols[0] if len(cols) == 1 else jnp.concatenate(cols, axis=-1)
    return patches.reshape(n * ho * wo, kh * kw * cin), (n, ho, wo)


@functools.lru_cache(maxsize=None)
def _get_conv_fn(kh, kw, stride, dilation, padding, relu, has_res):
    def fn(x, w2d, scale, bias, *maybe_res):
        patches, (n, ho, wo) = _im2col(x, kh, kw, stride, dilation, padding)
        residual = None
        if has_res:
            residual = maybe_res[0].reshape(n * ho * wo, -1)
        out = _matmul_bn_act(patches, w2d, scale, bias, residual, relu)
        return out.reshape(n, ho, wo, -1)
    return jax.jit(fn)


def conv_bn_act(x, w2d, scale, bias, *, kh, kw, stride, dilation, padding,
                relu, residual=None):
    fn = _get_conv_fn(kh, kw, stride, dilation, padding, bool(relu),
                      residual is not None)
    if residual is not None:
        return fn(x, w2d, scale, bias, residual)
    return fn(x, w2d, scale, bias)


# ----------------------------------------------------------------------------
# Deterministic parameter construction (synthetic, no checkpoint)
# ----------------------------------------------------------------------------
_KEY = jax.random.PRNGKey(0)


def _next_key():
    global _KEY
    _KEY, sub = jax.random.split(_KEY)
    return sub


class ConvBN:
    """Conv2d(bias=False) + BatchNorm2d (eval mode, folded) + optional ReLU."""
    # TODO(synk): eval-mode BN only (running stats folded into scale/bias);
    #             training-mode batch statistics are not reproduced.
    # TODO(synk): pretrained drn_d_38 weights cannot be loaded here — all
    #             parameters are deterministic synthetic values from PRNGKey(0).

    def __init__(self, cin, cout, k=3, stride=1, dilation=1, padding=None,
                 relu=True):
        if padding is None:
            padding = dilation * (k // 2)
        self.k, self.stride, self.dilation, self.padding, self.relu = (
            k, stride, dilation, padding, relu)
        kw_, ks, kb = jax.random.split(_next_key(), 3)
        fan_in = k * k * cin
        w = jax.random.normal(kw_, (k, k, cin, cout), jnp.float32) * (
            (2.0 / fan_in) ** 0.5)
        # Weight pre-folded to (kh*kw*Cin, Cout) and pre-cast to bf16 so the
        # kernel's single MXU contraction needs no per-call relayout.
        self.w2d = w.reshape(k * k * cin, cout).astype(jnp.bfloat16)
        # Folded BN: scale = gamma / sqrt(var + eps), bias = beta - mean * scale
        self.scale = (1.0 + 0.05 * jax.random.normal(ks, (cout,), jnp.float32)
                      ).reshape(1, cout)
        self.bias = (0.05 * jax.random.normal(kb, (cout,), jnp.float32)
                     ).reshape(1, cout)

    def __call__(self, x, residual=None):
        return conv_bn_act(x, self.w2d, self.scale, self.bias,
                           kh=self.k, kw=self.k, stride=self.stride,
                           dilation=self.dilation, padding=self.padding,
                           relu=self.relu, residual=residual)


class BasicBlock:
    """DRN BasicBlock: conv-bn-relu, conv-bn, (+downsample residual), relu."""
    # TODO(synk): conv2 already fuses BN + residual-add + ReLU into its kernel;
    #             fusing the whole block (downsample + conv1 + conv2) into one
    #             pallas_call would need in-kernel halo im2col and is left out.

    def __init__(self, inplanes, planes, stride=1, dilation=(1, 1),
                 downsample=False):
        self.conv1 = ConvBN(inplanes, planes, k=3, stride=stride,
                            dilation=dilation[0], padding=dilation[0], relu=True)
        self.conv2 = ConvBN(planes, planes, k=3, stride=1,
                            dilation=dilation[1], padding=dilation[1], relu=True)
        self.downsample = (ConvBN(inplanes, planes, k=1, stride=stride,
                                  dilation=1, padding=0, relu=False)
                           if downsample else None)

    def __call__(self, x):
        res = self.downsample(x) if self.downsample is not None else x
        out = self.conv1(x)
        out = self.conv2(out, residual=res)
        return out


def _make_res_layer(inplanes, planes, blocks, stride=1, dilation=1,
                    new_level=True):
    downsample = (stride != 1) or (inplanes != planes)
    first_dil = ((1, 1) if dilation == 1 else
                 ((dilation // 2 if new_level else dilation), dilation))
    layers = [BasicBlock(inplanes, planes, stride, first_dil, downsample)]
    for _ in range(1, blocks):
        layers.append(BasicBlock(planes, planes, 1, (dilation, dilation), False))
    return layers


class CoordNet:
    """Pallas re-implementation of CoordNet (DRN-D-38 feature pyramid)."""

    def __init__(self, input_dim=(3, 64, 64)):
        self.input_shape_chw = input_dim
        ch = [16, 32, 64, 128, 256, 512, 512, 512]          # drn_d_38 channels
        # drn_d_38 layers = [1, 1, 3, 4, 6, 3, 1, 1], arch 'D'
        self.layer0 = ConvBN(input_dim[0], ch[0], k=7, stride=1, padding=3)
        self.layer1 = [ConvBN(ch[0], ch[0], k=3, stride=1, padding=1)]
        self.layer2 = [ConvBN(ch[0], ch[1], k=3, stride=2, padding=1)]
        self.layer3 = _make_res_layer(ch[1], ch[2], 3, stride=2)
        self.layer4 = _make_res_layer(ch[2], ch[3], 4, stride=2)
        self.layer5 = _make_res_layer(ch[3], ch[4], 6, dilation=2,
                                      new_level=False)
        self.layer6 = _make_res_layer(ch[4], ch[5], 3, dilation=4,
                                      new_level=False)
        self.layer7 = [ConvBN(ch[5], ch[6], k=3, stride=1, dilation=2, padding=2)]
        self.layer8 = [ConvBN(ch[6], ch[7], k=3, stride=1, dilation=1, padding=1)]
        # CoordNet.block7: Conv2d(512, 512, 3, stride=2, pad=1) + BN + ReLU
        self.block7 = ConvBN(ch[7], 512, k=3, stride=2, padding=1)

    def __call__(self, x_nchw):
        # layout: convert PyTorch NCHW -> NHWC for the kernels.
        x = jnp.transpose(x_nchw, (0, 2, 3, 1)).astype(jnp.float32)

        def seq(layers, v):
            for layer in layers:
                v = layer(v)
            return v

        x0 = seq(self.layer1, self.layer0(x))        # block0
        x1 = seq(self.layer2, x0)                    # block1
        x2 = seq(self.layer3, x1)                    # block2
        x3 = seq(self.layer4, x2)                    # block3
        x4 = seq(self.layer5, x3)                    # block4
        x5 = seq(self.layer6, x4)                    # block5
        x6 = seq(self.layer8, seq(self.layer7, x5))  # block6
        x7 = self.block7(x6)                         # block7

        to_nchw = lambda t: jnp.transpose(t, (0, 3, 1, 2))
        return tuple(to_nchw(t) for t in (x7, x6, x5, x4, x3, x2, x1, x0))


if __name__ == "__main__":
    key = jax.random.PRNGKey(0)
    # Small NCHW input consistent with the module (3 input channels).
    x = jax.random.normal(key, (2, 3, 64, 64), jnp.float32)

    net = CoordNet(input_dim=(3, 64, 64))
    outs = net(x)
    outs = jax.block_until_ready(outs)

    # Sanity: expected pyramid shapes for a 64x64 input.
    expected = [(2, 512, 4, 4), (2, 512, 8, 8), (2, 512, 8, 8), (2, 256, 8, 8),
                (2, 128, 8, 8), (2, 64, 16, 16), (2, 32, 32, 32),
                (2, 16, 64, 64)]
    assert [tuple(o.shape) for o in outs] == expected
    assert all(bool(jnp.all(jnp.isfinite(o))) for o in outs)

    print("KERNEL_OK")
</pallas_src>

<mosaic_0001>
module attributes {stable_mosaic.version = 11 : i64} {
  func.func @kernel(%arg0: i32, %arg1: i32, %arg2: memref<512x147xbf16, #tpu.memory_space<vmem>>, %arg3: memref<147x16xbf16, #tpu.memory_space<vmem>>, %arg4: memref<1x16xf32, #tpu.memory_space<vmem>>, %arg5: memref<1x16xf32, #tpu.memory_space<vmem>>, %arg6: memref<512x16xf32, #tpu.memory_space<vmem>>) attributes {dimension_semantics = [#tpu.dimension_semantics<parallel>, #tpu.dimension_semantics<parallel>], iteration_bounds = array<i64: 16, 1>, scalar_prefetch = 0 : i64, scratch_operands = 0 : i64, tpu.core_type = #tpu.core_type<tc>, window_params = [{transform_indices = @transform_0, window_bounds = array<i64: 512, 147>}, {transform_indices = @transform_1, window_bounds = array<i64: 147, 16>}, {transform_indices = @transform_2, window_bounds = array<i64: 1, 16>}, {transform_indices = @transform_3, window_bounds = array<i64: 1, 16>}, {transform_indices = @transform_4, window_bounds = array<i64: 512, 16>}]} {
    %c0 = arith.constant 0 : index
    %c0_0 = arith.constant 0 : index
    %0 = vector.load %arg2[%c0, %c0_0] : memref<512x147xbf16, #tpu.memory_space<vmem>>, vector<512x147xbf16>
    %c0_1 = arith.constant 0 : index
    %c0_2 = arith.constant 0 : index
    %1 = vector.load %arg3[%c0_1, %c0_2] : memref<147x16xbf16, #tpu.memory_space<vmem>>, vector<147x16xbf16>
    %cst = arith.constant dense<0.000000e+00> : vector<512x16xf32>
    %2 = tpu.matmul %0, %1, %cst {dimension_numbers = #tpu.dot_dimension_numbers<[1], [0], [0], [1], [0, 0, 1, 1], [], []>} : vector<512x147xbf16>, vector<147x16xbf16>, vector<512x16xf32> -> vector<512x16xf32>
    %c0_3 = arith.constant 0 : index
    %c0_4 = arith.constant 0 : index
    %3 = vector.load %arg4[%c0_3, %c0_4] : memref<1x16xf32, #tpu.memory_space<vmem>>, vector<1x16xf32>
    %4 = vector.broadcast %3 : vector<1x16xf32> to vector<512x16xf32>
    %5 = arith.mulf %2, %4 : vector<512x16xf32>
    %c0_5 = arith.constant 0 : index
    %c0_6 = arith.constant 0 : index
    %6 = vector.load %arg5[%c0_5, %c0_6] : memref<1x16xf32, #tpu.memory_space<vmem>>, vector<1x16xf32>
    %7 = vector.broadcast %6 : vector<1x16xf32> to vector<512x16xf32>
    %8 = arith.addf %5, %7 : vector<512x16xf32>
    %cst_7 = arith.constant 0.000000e+00 : f32
    %9 = vector.broadcast %cst_7 : f32 to vector<512x16xf32>
    %10 = arith.maximumf %8, %9 : vector<512x16xf32>
    %c0_8 = arith.constant 0 : index
    %c0_9 = arith.constant 0 : index
    %11 = vector.load %arg6[%c0_8, %c0_9] : memref<512x16xf32, #tpu.memory_space<vmem>>, vector<512x16xf32>
    tpu.vector_store %arg6[%c0_8, %c0_9], %10 {strides = array<i32>} : memref<512x16xf32, #tpu.memory_space<vmem>>, vector<512x16xf32>,
    return
  }
  func.func @transform_0(%arg0: i32, %arg1: i32) -> (i32, i32) {
    %c0_i32 = arith.constant 0 : i32
    %c0_i32_0 = arith.constant 0 : i32
    return %arg0, %c0_i32 : i32, i32
  }
  func.func @transform_1(%arg0: i32, %arg1: i32) -> (i32, i32) {
    %c0_i32 = arith.constant 0 : i32
    %c0_i32_0 = arith.constant 0 : i32
    return %c0_i32, %arg1 : i32, i32
  }
  func.func @transform_2(%arg0: i32, %arg1: i32) -> (i32, i32) {
    %c0_i32 = arith.constant 0 : i32
    %c0_i32_0 = arith.constant 0 : i32
    return %c0_i32, %arg1 : i32, i32
  }
  func.func @transform_3(%arg0: i32, %arg1: i32) -> (i32, i32) {
    %c0_i32 = arith.constant 0 : i32
    %c0_i32_0 = arith.constant 0 : i32
    return %c0_i32, %arg1 : i32, i32
  }
  func.func @transform_4(%arg0: i32, %arg1: i32) -> (i32, i32) {
    %c0_i32 = arith.constant 0 : i32
    return %arg0, %arg1 : i32, i32
  }
}

</mosaic_0001>

<bundles_post_ra>
// kernel: fn.1
= control target key start
LH: loop header
LB: loop body
LE: loop exit
PB: predicated region body
PF: predicated region fallthrough
CT: control target
= control target key end

     0   :  { %s1803_s15 = smov 0   ;;  %s1805_s16 = smov 0   ;;  %s2239_s0 = inlined_call_operand.vmem [shape: bf16[8192,147], index: 0, kind: input, shape index: {}]   ;;  %s2240_s1 = inlined_call_operand.vmem [shape: bf16[147,16], index: 1, kind: input, shape index: {}]   ;;  %s2241_s2 = inlined_call_operand.vmem [shape: f32[1,16], index: 2, kind: input, shape index: {}]   ;;  %s2242_s3 = inlined_call_operand.vmem [shape: f32[1,16], index: 3, kind: input, shape index: {}]   ;;  %s2243_s4 = inlined_call_operand.vmem [shape: f32[8192,16], index: 4, kind: output, shape index: {}]  }
   0x1   :  { %s1807_s17 = smov 0  }
   0x2 LB: > { %s26_s18 = sadd.s32 1, %s1770_s16  ;;  %p1483_p0 = scmp.ge.s32.totalorder %s1774_s17, 1  ;;  %s1774_s17 = sphi %s1807_s17, %s14_s17   ;;  %s1770_s16 = sphi %s1805_s16, %s2245_s16   ;;  %s1766_s15 = sphi %s1803_s15, %s2244_s15  }
   0x3   : > { %p28_p1 = scmp.ge.s32.totalorder %s26_s18, 16  ;;  %p203_p2 = scmp.lt.s32.totalorder %s1774_s17, 17 }
   0x5   : > { %s2247_s18 = smov (%p28_p1, %s26_s18), 0  ;;  %p204_p3 = pnand %p1483_p0, %p203_p2 }
   0x6   : > { %v1646_v0 = vld [vmem:[%s2240_s1] sm:$0xff] (!%p204_p3)   ;;  %v1776_v1 = vmov (!%p204_p3), 0   ;;  %v1647_v2 = vld [vmem:[%s2240_s1 + $0x8] sm:$0xff] (!%p204_p3)   ;;  %v1648_v3 = vld [vmem:[%s2240_s1 + $0x10] sm:$0xff] (!%p204_p3)   ;;  %s1484_s25 = sshll.u32 (!%p204_p3), %s1766_s15, 6  ;;  %vm698_vm0 = vcmask (!%p204_p3), 154624  }
   0x7   : > { %207 = sbr.rel (%p204_p3) target bundleno = 388 (0x184), region = 36  ;;  %802 = vmatprep.subr.bf16.mxu0 (!%p204_p3), %v1776_v1  ;;  %1600 = vmatprep.subr.bf16.mxu1 (!%p204_p3), %v1776_v1  ;;  %p244_p4 = scmp.lt.s32.totalorder (!%p204_p3), %s1484_s25, 1023  ;;  %v1649_v4 = vld [vmem:[%s2240_s1 + $0x18] sm:$0xff] (!%p204_p3)   ;;  %v1650_v5 = vld [vmem:[%s2240_s1 + $0x20] sm:$0xff] (!%p204_p3)   ;;  %v1651_v8 = vld [vmem:[%s2240_s1 + $0x28] sm:$0xff] (!%p204_p3)   ;;  %vm795_vm1 = vcmask (!%p204_p3), 1040384  }
   0x8   : > { %803 = vmatpush1.bf16.msra.mxu0 (!%p204_p3), %v1646_v0  ;;  %1610 = vmatpush1.bf16.msra.mxu1 (!%p204_p3), %v1646_v0  ;;  %v1652_v9 = vld [vmem:[%s2240_s1 + $0x30] sm:$0xff] (!%p204_p3)   ;;  %v1653_v10 = vld [vmem:[%s2240_s1 + $0x38] sm:$0xff] (!%p204_p3)   ;;  %vm796_vm2 = vcmask (!%p204_p3), 1041408   ;;  %v1777_v11 = vmov (!%p204_p3), 65535   ;;  %v1654_v13 = vld [vmem:[%s2240_s1 + $0x40] sm:$0xff] (!%p204_p3)   ;;  %vm1297_vm3 = vcmask (!%p204_p3), 130048  }
   0x9   : > { %804 = vmatprep.subr.bf16.mxu0 (!%p204_p3), %v1776_v1  ;;  %1601 = vmatprep.subr.bf16.mxu1 (!%p204_p3), %v1776_v1  ;;  %v797_v12 = vsel (!%p204_p3), %vm795_vm1, 4294967295, %v1777_v11  ;;  %v1655_v14 = vld [vmem:[%s2240_s1 + $0x48] ss:$0 sps:$4 sm:$0x33] (!%p204_p3)  }
   0xa   : > { %v798_v15 = vsel (!%p204_p3), %vm796_vm2, %v797_v12, 0 }
   0xb   : > { %v800_v16 = vand.u32 (!%p204_p3), %v1655_v14, %v798_v15  ;;  %v1960_v15 = vld [vmem:[%s2241_s2] ss:$0 sm:$0xff] (!%p204_p3) }
   0xc   : > { %805 = vmatpush1.bf16.msra.mxu0 (!%p204_p3), %v1647_v2  ;;  %1611 = vmatpush1.bf16.msra.mxu1 (!%p204_p3), %v1647_v2 }
   0xd   : > { %806 = vmatprep.subr.bf16.mxu0 (!%p204_p3), %v1776_v1  ;;  %1602 = vmatprep.subr.bf16.mxu1 (!%p204_p3), %v1776_v1 }
   0xe   : > { %s2249_s25 = smov (!%p244_p4, %s1484_s25), 1023 }
   0xf   : > { %s1599_s28 = sshll.u32 %s2249_s25, 3 }
  0x10   : > { %807 = vmatpush1.bf16.msra.mxu0 %v1648_v3  ;;  %1612 = vmatpush1.bf16.msra.mxu1 %v1648_v3  ;;  %s1841_s5 = scalar_lea.vmem %s2239_s0, %s1599_s28  ;;  %s1978_s29 = scalar_lea.vmem %s2243_s4, %s1599_s28 }
  0x11   : > { %808 = vmatprep.subr.bf16.mxu0 %v1776_v1  ;;  %1603 = vmatprep.subr.bf16.mxu1 %v1776_v1  ;;  %v1658_v6 = vld [vmem:[%s1841_s5 + $0x4] ss:$8 sps:$4 sm:$0xff]   ;;  %v1656_v17 = vld [vmem:[%s1841_s5] ss:$8 sps:$4 sm:$0xff]   ;;  %v1662_v19 = vld [vmem:[%s1841_s5 + $0x14] ss:$8 sps:$4 sm:$0xff]  }
  0x12   : > { %v1661_v7 = vld [vmem:[%s1841_s5 + $0x104] ss:$8 sps:$4 sm:$0xff]   ;;  %1563 = vmatprep.mubr.msk.bf16.mxu0 %vm698_vm0, %v1658_v6  ;;  %v1659_v18 = vld [vmem:[%s1841_s5 + $0x100] ss:$8 sps:$4 sm:$0xff]   ;;  %v1664_v20 = vld [vmem:[%s1841_s5 + $0x114] ss:$8 sps:$4 sm:$0xff]  }
  0x13   : > { %1579 = vmatprep.mubr.msk.bf16.mxu1 %vm698_vm0, %v1661_v7  ;;  %v1666_v21 = vld [vmem:[%s1841_s5 + $0x10] ss:$8 sps:$4 sm:$0xff]   ;;  %v1668_v23 = vld [vmem:[%s1841_s5 + $0x24] ss:$8 sps:$4 sm:$0xff]   ;;  %v1672_v25 = vld [vmem:[%s1841_s5 + $0x20] ss:$8 sps:$4 sm:$0xff]  }
  0x14   : > { %809 = vmatpush1.bf16.msra.mxu0 %v1649_v4  ;;  %1613 = vmatpush1.bf16.msra.mxu1 %v1649_v4  ;;  %v1667_v22 = vld [vmem:[%s1841_s5 + $0x110] ss:$8 sps:$4 sm:$0xff]   ;;  %v1670_v24 = vld [vmem:[%s1841_s5 + $0x124] ss:$8 sps:$4 sm:$0xff]   ;;  %v1673_v26 = vld [vmem:[%s1841_s5 + $0x120] ss:$8 sps:$4 sm:$0xff]  }
  0x15   : > { %810 = vmatprep.subr.bf16.mxu0 %v1776_v1  ;;  %1604 = vmatprep.subr.bf16.mxu1 %v1776_v1  ;;  %v1674_v27 = vld [vmem:[%s1841_s5 + $0x34] ss:$8 sps:$4 sm:$0xff]   ;;  %v1678_v29 = vld [vmem:[%s1841_s5 + $0x30] ss:$8 sps:$4 sm:$0xff]   ;;  %v1680_v31 = vld [vmem:[%s1841_s5 + $0x44] ss:$8 sps:$4 sm:$0xff]  }
  0x16   : > { %v1676_v28 = vld [vmem:[%s1841_s5 + $0x134] ss:$8 sps:$4 sm:$0xff]   ;;  %v1679_v30 = vld [vmem:[%s1841_s5 + $0x130] ss:$8 sps:$4 sm:$0xff]   ;;  %v1682_v32 = vld [vmem:[%s1841_s5 + $0x144] ss:$8 sps:$4 sm:$0xff]  }
  0x17   : > { %v1684_v33 = vld [vmem:[%s1841_s5 + $0x40] ss:$8 sps:$4 sm:$0xff]   ;;  %v1686_v35 = vld [vmem:[%s1841_s5 + $0x54] ss:$8 sps:$4 sm:$0xff]   ;;  %v1690_v37 = vld [vmem:[%s1841_s5 + $0x50] ss:$8 sps:$4 sm:$0xff]  }
  0x18   : > { %811 = vmatpush1.bf16.msra.mxu0 %v1650_v5  ;;  %1614 = vmatpush1.bf16.msra.mxu1 %v1650_v5  ;;  %v1685_v34 = vld [vmem:[%s1841_s5 + $0x140] ss:$8 sps:$4 sm:$0xff]   ;;  %v1688_v36 = vld [vmem:[%s1841_s5 + $0x154] ss:$8 sps:$4 sm:$0xff]   ;;  %v1691_v38 = vld [vmem:[%s1841_s5 + $0x150] ss:$8 sps:$4 sm:$0xff]  }
  0x19   : > { %812 = vmatprep.subr.bf16.mxu0 %v1776_v1  ;;  %1605 = vmatprep.subr.bf16.mxu1 %v1776_v1  ;;  %v1692_v39 = vld [vmem:[%s1841_s5 + $0x64] ss:$8 sps:$4 sm:$0xff]   ;;  %v1696_v41 = vld [vmem:[%s1841_s5 + $0x60] ss:$8 sps:$4 sm:$0xff]   ;;  %v1698_v43 = vld [vmem:[%s1841_s5 + $0x74] ss:$8 sps:$4 sm:$0xff]  }
  0x1a   : > { %v1694_v40 = vld [vmem:[%s1841_s5 + $0x164] ss:$8 sps:$4 sm:$0xff]   ;;  %v1697_v42 = vld [vmem:[%s1841_s5 + $0x160] ss:$8 sps:$4 sm:$0xff]   ;;  %v1700_v44 = vld [vmem:[%s1841_s5 + $0x174] ss:$8 sps:$4 sm:$0xff]  }
  0x1b   : > { %v1702_v45 = vld [vmem:[%s1841_s5 + $0x70] ss:$8 sps:$4 sm:$0xff]   ;;  %v1704_v47 = vld [vmem:[%s1841_s5 + $0x84] ss:$8 sps:$4 sm:$0xff]   ;;  %v1708_v49 = vld [vmem:[%s1841_s5 + $0x80] ss:$8 sps:$4 sm:$0xff]  }
  0x1c   : > { %813 = vmatpush1.bf16.msra.mxu0 %v1651_v8  ;;  %1615 = vmatpush1.bf16.msra.mxu1 %v1651_v8  ;;  %v1703_v46 = vld [vmem:[%s1841_s5 + $0x170] ss:$8 sps:$4 sm:$0xff]   ;;  %v1706_v48 = vld [vmem:[%s1841_s5 + $0x184] ss:$8 sps:$4 sm:$0xff]   ;;  %v1709_v50 = vld [vmem:[%s1841_s5 + $0x180] ss:$8 sps:$4 sm:$0xff]  }
  0x1d   : > { %814 = vmatprep.subr.bf16.mxu0 %v1776_v1  ;;  %1606 = vmatprep.subr.bf16.mxu1 %v1776_v1  ;;  %v1710_v51 = vld [vmem:[%s1841_s5 + $0x94] ss:$8 sps:$4 sm:$0xff]   ;;  %v1714_v53 = vld [vmem:[%s1841_s5 + $0x90] ss:$8 sps:$4 sm:$0xff]   ;;  %v1716_v55 = vld [vmem:[%s1841_s5 + $0xa4] ss:$8 sps:$4 sm:$0xff]  }
  0x1e   : > { %v1712_v52 = vld [vmem:[%s1841_s5 + $0x194] ss:$8 sps:$4 sm:$0xff]   ;;  %v1715_v54 = vld [vmem:[%s1841_s5 + $0x190] ss:$8 sps:$4 sm:$0xff]   ;;  %v1718_v56 = vld [vmem:[%s1841_s5 + $0x1a4] ss:$8 sps:$4 sm:$0xff]  }
  0x1f   : > { %v1720_v57 = vld [vmem:[%s1841_s5 + $0xa0] ss:$8 sps:$4 sm:$0xff]   ;;  %v1722_v59 = vld [vmem:[%s1841_s5 + $0xb4] ss:$8 sps:$4 sm:$0xff]   ;;  %v1726_v61 = vld [vmem:[%s1841_s5 + $0xb0] ss:$8 sps:$4 sm:$0xff]  }
  0x20   : > { %815 = vmatpush1.bf16.msra.mxu0 %v1652_v9  ;;  %1616 = vmatpush1.bf16.msra.mxu1 %v1652_v9  ;;  %v1721_v58 = vld [vmem:[%s1841_s5 + $0x1a0] ss:$8 sps:$4 sm:$0xff]   ;;  %v1724_v60 = vld [vmem:[%s1841_s5 + $0x1b4] ss:$8 sps:$4 sm:$0xff]   ;;  %v1727_v62 = vld [vmem:[%s1841_s5 + $0x1b0] ss:$8 sps:$4 sm:$0xff]  }
  0x21   : > { %816 = vmatprep.subr.bf16.mxu0 %v1776_v1  ;;  %1607 = vmatprep.subr.bf16.mxu1 %v1776_v1  ;;  %v1728_v63 = vld [vmem:[%s1841_s5 + $0xc4] ss:$8 sps:$4 sm:$0xff]   ;;  %v1733_v2 = vld [vmem:[%s1841_s5 + $0x1c0] ss:$8 sps:$4 sm:$0xff]   ;;  %v1734_v3 = vld [vmem:[%s1841_s5 + $0xd4] ss:$8 sps:$4 sm:$0xff]  }
  0x22   : > { %v1730_v0 = vld [vmem:[%s1841_s5 + $0x1c4] ss:$8 sps:$4 sm:$0xff]   ;;  %v1736_v4 = vld [vmem:[%s1841_s5 + $0x1d4] ss:$8 sps:$4 sm:$0xff]   ;;  %v1738_v5 = vld [vmem:[%s1841_s5 + $0xd0] ss:$8 sps:$4 sm:$0xff]  }
  0x23   : > { %v1739_v6 = vld [vmem:[%s1841_s5 + $0x1d0] ss:$8 sps:$4 sm:$0xff]   ;;  %v1740_v7 = vld [vmem:[%s1841_s5 + $0xe4] ss:$8 sps:$4 sm:$0xff]   ;;  %v1744_v9 = vld [vmem:[%s1841_s5 + $0xe0] ss:$8 sps:$4 sm:$0xff]  }
  0x24   : > { %817 = vmatpush1.bf16.msra.mxu0 %v1653_v10  ;;  %1617 = vmatpush1.bf16.msra.mxu1 %v1653_v10  ;;  %v1742_v8 = vld [vmem:[%s1841_s5 + $0x1e4] ss:$8 sps:$4 sm:$0xff]   ;;  %v1745_v10 = vld [vmem:[%s1841_s5 + $0x1e0] ss:$8 sps:$4 sm:$0xff]   ;;  %v1746_v11 = vld [vmem:[%s1841_s5 + $0xf4] ss:$8 sps:$4 sm:$0xff]  }
  0x25   : > { %818 = vmatprep.subr.bf16.mxu0 %v1776_v1  ;;  %1608 = vmatprep.subr.bf16.mxu1 %v1776_v1  ;;  %v1748_v12 = vld [vmem:[%s1841_s5 + $0x1f4] ss:$8 sps:$4 sm:$0xff]   ;;  %v1751_v14 = vld [vmem:[%s1841_s5 + $0x1f0] ss:$8 sps:$4 sm:$0xff]  }
  0x28   : > { %819 = vmatpush1.bf16.msra.mxu0 %v1654_v13  ;;  %1618 = vmatpush1.bf16.msra.mxu1 %v1654_v13  ;;  %v1750_v13 = vld [vmem:[%s1841_s5 + $0xf0] ss:$8 sps:$4 sm:$0xff]  }
  0x29   : > { %820 = vmatprep.subr.bf16.mxu0 %v1776_v1  ;;  %1609 = vmatprep.subr.bf16.mxu1 %v1776_v1  ;;  %v1732_v1 = vld [vmem:[%s1841_s5 + $0xc0] ss:$8 sps:$4 sm:$0xff]  }
  0x2c   : > { %821 = vmatpush1.bf16.msra.mxu0 %v800_v16  ;;  %1619 = vmatpush1.bf16.msra.mxu1 %v800_v16 }
  0x2f   : > { %835 = vmatmul.mubr.bf16.vlgmr.msra.gmra.mrb[0].mxu0 %v1656_v17  ;;  %963 = vmatmul.mubr.bf16.vlgmr.msra.gmra.mrb[0].mxu1 %v1659_v18  ;;  %v1965_v17 = vld [vmem:[%s2242_s3] ss:$0 sm:$0xff] }
  0x30   : > { %1564 = vmatprep.mubr.msk.bf16.mxu0 %vm698_vm0, %v1662_v19  ;;  %1580 = vmatprep.mubr.msk.bf16.mxu1 %vm698_vm0, %v1664_v20 }
  0x37   : > { %843 = vmatmul.mubr.bf16.gmra.mrb[4].mxu0 %v1666_v21  ;;  %971 = vmatmul.mubr.bf16.gmra.mrb[4].mxu1 %v1667_v22 }
  0x38   : > { %1565 = vmatprep.mubr.msk.bf16.mxu0 %vm698_vm0, %v1668_v23  ;;  %1581 = vmatprep.mubr.msk.bf16.mxu1 %vm698_vm0, %v1670_v24 }
  0x3f   : > { %851 = vmatmul.mubr.bf16.gmra.mrb[8].mxu0 %v1672_v25  ;;  %979 = vmatmul.mubr.bf16.gmra.mrb[8].mxu1 %v1673_v26 }
  0x40   : > { %1566 = vmatprep.mubr.msk.bf16.mxu0 %vm698_vm0, %v1674_v27  ;;  %1582 = vmatprep.mubr.msk.bf16.mxu1 %vm698_vm0, %v1676_v28 }
  0x47   : > { %859 = vmatmul.mubr.bf16.gmra.mrb[12].mxu0 %v1678_v29  ;;  %987 = vmatmul.mubr.bf16.gmra.mrb[12].mxu1 %v1679_v30 }
  0x48   : > { %1567 = vmatprep.mubr.msk.bf16.mxu0 %vm698_vm0, %v1680_v31  ;;  %1583 = vmatprep.mubr.msk.bf16.mxu1 %vm698_vm0, %v1682_v32 }
  0x4f   : > { %867 = vmatmul.mubr.bf16.gmra.mrb[16].mxu0 %v1684_v33  ;;  %995 = vmatmul.mubr.bf16.gmra.mrb[16].mxu1 %v1685_v34 }
  0x50   : > { %1568 = vmatprep.mubr.msk.bf16.mxu0 %vm698_vm0, %v1686_v35  ;;  %1584 = vmatprep.mubr.msk.bf16.mxu1 %vm698_vm0, %v1688_v36 }
  0x57   : > { %875 = vmatmul.mubr.bf16.gmra.mrb[20].mxu0 %v1690_v37  ;;  %1003 = vmatmul.mubr.bf16.gmra.mrb[20].mxu1 %v1691_v38 }
  0x58   : > { %1569 = vmatprep.mubr.msk.bf16.mxu0 %vm698_vm0, %v1692_v39  ;;  %1585 = vmatprep.mubr.msk.bf16.mxu1 %vm698_vm0, %v1694_v40 }
  0x5f   : > { %883 = vmatmul.mubr.bf16.gmra.mrb[24].mxu0 %v1696_v41  ;;  %1011 = vmatmul.mubr.bf16.gmra.mrb[24].mxu1 %v1697_v42 }
  0x60   : > { %1570 = vmatprep.mubr.msk.bf16.mxu0 %vm698_vm0, %v1698_v43  ;;  %1586 = vmatprep.mubr.msk.bf16.mxu1 %vm698_vm0, %v1700_v44 }
  0x67   : > { %891 = vmatmul.mubr.bf16.gmra.mrb[28].mxu0 %v1702_v45  ;;  %1019 = vmatmul.mubr.bf16.gmra.mrb[28].mxu1 %v1703_v46 }
  0x68   : > { %1571 = vmatprep.mubr.msk.bf16.mxu0 %vm698_vm0, %v1704_v47  ;;  %1587 = vmatprep.mubr.msk.bf16.mxu1 %vm698_vm0, %v1706_v48 }
  0x6f   : > { %899 = vmatmul.mubr.bf16.gmra.mrb[32].mxu0 %v1708_v49  ;;  %1027 = vmatmul.mubr.bf16.gmra.mrb[32].mxu1 %v1709_v50 }
  0x70   : > { %1572 = vmatprep.mubr.msk.bf16.mxu0 %vm698_vm0, %v1710_v51  ;;  %1588 = vmatprep.mubr.msk.bf16.mxu1 %vm698_vm0, %v1712_v52 }
  0x77   : > { %907 = vmatmul.mubr.bf16.gmra.mrb[36].mxu0 %v1714_v53  ;;  %1035 = vmatmul.mubr.bf16.gmra.mrb[36].mxu1 %v1715_v54 }
  0x78   : > { %1573 = vmatprep.mubr.msk.bf16.mxu0 %vm698_vm0, %v1716_v55  ;;  %1589 = vmatprep.mubr.msk.bf16.mxu1 %vm698_vm0, %v1718_v56 }
  0x7f   : > { %915 = vmatmul.mubr.bf16.gmra.mrb[40].mxu0 %v1720_v57  ;;  %1043 = vmatmul.mubr.bf16.gmra.mrb[40].mxu1 %v1721_v58 }
  0x80   : > { %1574 = vmatprep.mubr.msk.bf16.mxu0 %vm698_vm0, %v1722_v59  ;;  %1590 = vmatprep.mubr.msk.bf16.mxu1 %vm698_vm0, %v1724_v60 }
  0x87   : > { %923 = vmatmul.mubr.bf16.gmra.mrb[44].mxu0 %v1726_v61  ;;  %1051 = vmatmul.mubr.bf16.gmra.mrb[44].mxu1 %v1727_v62 }
  0x88   : > { %1575 = vmatprep.mubr.msk.bf16.mxu0 %vm698_vm0, %v1728_v63  ;;  %1591 = vmatprep.mubr.msk.bf16.mxu1 %vm698_vm0, %v1730_v0 }
  0x8f   : > { %931 = vmatmul.mubr.bf16.gmra.mrb[48].mxu0 %v1732_v1  ;;  %1059 = vmatmul.mubr.bf16.gmra.mrb[48].mxu1 %v1733_v2 }
  0x90   : > { %1576 = vmatprep.mubr.msk.bf16.mxu0 %vm698_vm0, %v1734_v3  ;;  %1592 = vmatprep.mubr.msk.bf16.mxu1 %vm698_vm0, %v1736_v4 }
  0x97   : > { %939 = vmatmul.mubr.bf16.gmra.mrb[52].mxu0 %v1738_v5  ;;  %1067 = vmatmul.mubr.bf16.gmra.mrb[52].mxu1 %v1739_v6 }
  0x98   : > { %1577 = vmatprep.mubr.msk.bf16.mxu0 %vm698_vm0, %v1740_v7  ;;  %1593 = vmatprep.mubr.msk.bf16.mxu1 %vm698_vm0, %v1742_v8 }
  0x9f   : > { %947 = vmatmul.mubr.bf16.gmra.mrb[56].mxu0 %v1744_v9  ;;  %1075 = vmatmul.mubr.bf16.gmra.mrb[56].mxu1 %v1745_v10 }
  0xa0   : > { %1578 = vmatprep.mubr.msk.bf16.mxu0 %vm698_vm0, %v1746_v11  ;;  %1594 = vmatprep.mubr.msk.bf16.mxu1 %vm698_vm0, %v1748_v12 }
  0xa7   : > { %955 = vmatmul.mubr.bf16.gmra.mrb[60].mxu0 %v1750_v13  ;;  %1083 = vmatmul.mubr.bf16.gmra.mrb[60].mxu1 %v1751_v14 }
 0x102   : > { %v836_v16 = vpop.f32.mrb[0].mxu0  ;;  %v964_v18 = vpop.f32.mrb[0].mxu1 }
 0x103   : > { %v1098_v19 = vmul.f32 %v1960_v15, %v836_v16  ;;  %v1130_v20 = vmul.f32 %v1960_v15, %v964_v18  ;;  %v838_v21 = vpop.f32.mrb[1].mxu0  ;;  %v966_v22 = vpop.f32.mrb[1].mxu1 }
 0x104   : > { %v839_v23 = vpop.f32.mrb[2].mxu0  ;;  %v967_v24 = vpop.f32.mrb[2].mxu1 }
 0x105   : > { %v1169_v25 = vadd.f32 %v1965_v17, %v1098_v19  ;;  %v1201_v26 = vadd.f32 %v1965_v17, %v1130_v20  ;;  %v1099_v27 = vmul.f32 %v1960_v15, %v839_v23  ;;  %v1131_v28 = vmul.f32 %v1960_v15, %v967_v24  ;;  %v841_v29 = vpop.f32.mrb[3].mxu0  ;;  %v969_v30 = vpop.f32.mrb[3].mxu1 }
 0x107   : > { %v1233_v31 = vmax.f32 %v1169_v25, 0.0  ;;  %v1265_v32 = vmax.f32 %v1201_v26, 0.0  ;;  %v1170_v33 = vadd.f32 %v1965_v17, %v1099_v27  ;;  %v1202_v34 = vadd.f32 %v1965_v17, %v1131_v28 }
 0x109   : > { %1298 = vst.msk [vmem:[%s1978_s29] sm:$0xff] %vm1297_vm3, %v1233_v31  ;;  %1330 = vst.msk [vmem:[%s1978_s29 + $0x100] sm:$0xff] %vm1297_vm3, %v1265_v32  ;;  %v1234_v35 = vmax.f32 %v1170_v33, 0.0  ;;  %v1266_v36 = vmax.f32 %v1202_v34, 0.0 }
 0x10a   : > { %v844_v37 = vpop.f32.mrb[4].mxu0  ;;  %v972_v38 = vpop.f32.mrb[4].mxu1 }
 0x10b   : > { %1299 = vst.msk [vmem:[%s1978_s29 + $0x8] sm:$0xff] %vm1297_vm3, %v1234_v35  ;;  %1331 = vst.msk [vmem:[%s1978_s29 + $0x108] sm:$0xff] %vm1297_vm3, %v1266_v36  ;;  %v1100_v39 = vmul.f32 %v1960_v15, %v844_v37  ;;  %v1132_v40 = vmul.f32 %v1960_v15, %v972_v38  ;;  %v846_v41 = vpop.f32.mrb[5].mxu0  ;;  %v974_v42 = vpop.f32.mrb[5].mxu1 }
 0x10c   : > { %v847_v43 = vpop.f32.mrb[6].mxu0  ;;  %v975_v44 = vpop.f32.mrb[6].mxu1 }
 0x10d   : > { %v1171_v45 = vadd.f32 %v1965_v17, %v1100_v39  ;;  %v1203_v46 = vadd.f32 %v1965_v17, %v1132_v40  ;;  %v1101_v47 = vmul.f32 %v1960_v15, %v847_v43  ;;  %v1133_v48 = vmul.f32 %v1960_v15, %v975_v44  ;;  %v849_v49 = vpop.f32.mrb[7].mxu0  ;;  %v977_v50 = vpop.f32.mrb[7].mxu1 }
 0x10f   : > { %v1235_v51 = vmax.f32 %v1171_v45, 0.0  ;;  %v1267_v52 = vmax.f32 %v1203_v46, 0.0  ;;  %v1172_v53 = vadd.f32 %v1965_v17, %v1101_v47  ;;  %v1204_v54 = vadd.f32 %v1965_v17, %v1133_v48 }
 0x111   : > { %1300 = vst.msk [vmem:[%s1978_s29 + $0x10] sm:$0xff] %vm1297_vm3, %v1235_v51  ;;  %1332 = vst.msk [vmem:[%s1978_s29 + $0x110] sm:$0xff] %vm1297_vm3, %v1267_v52  ;;  %v1236_v55 = vmax.f32 %v1172_v53, 0.0  ;;  %v1268_v56 = vmax.f32 %v1204_v54, 0.0 }
 0x112   : > { %v852_v57 = vpop.f32.mrb[8].mxu0  ;;  %v980_v58 = vpop.f32.mrb[8].mxu1 }
 0x113   : > { %1301 = vst.msk [vmem:[%s1978_s29 + $0x18] sm:$0xff] %vm1297_vm3, %v1236_v55  ;;  %1333 = vst.msk [vmem:[%s1978_s29 + $0x118] sm:$0xff] %vm1297_vm3, %v1268_v56  ;;  %v1102_v59 = vmul.f32 %v1960_v15, %v852_v57  ;;  %v1134_v60 = vmul.f32 %v1960_v15, %v980_v58  ;;  %v854_v61 = vpop.f32.mrb[9].mxu0  ;;  %v982_v62 = vpop.f32.mrb[9].mxu1 }
 0x114   : > { %v855_v63 = vpop.f32.mrb[10].mxu0  ;;  %v983_v0 = vpop.f32.mrb[10].mxu1 }
 0x115   : > { %v1173_v1 = vadd.f32 %v1965_v17, %v1102_v59  ;;  %v1205_v2 = vadd.f32 %v1965_v17, %v1134_v60  ;;  %v1103_v3 = vmul.f32 %v1960_v15, %v855_v63  ;;  %v1135_v4 = vmul.f32 %v1960_v15, %v983_v0  ;;  %v857_v5 = vpop.f32.mrb[11].mxu0  ;;  %v985_v6 = vpop.f32.mrb[11].mxu1 }
 0x117   : > { %v1237_v7 = vmax.f32 %v1173_v1, 0.0  ;;  %v1269_v8 = vmax.f32 %v1205_v2, 0.0  ;;  %v1174_v9 = vadd.f32 %v1965_v17, %v1103_v3  ;;  %v1206_v10 = vadd.f32 %v1965_v17, %v1135_v4 }
 0x119   : > { %1302 = vst.msk [vmem:[%s1978_s29 + $0x20] sm:$0xff] %vm1297_vm3, %v1237_v7  ;;  %1334 = vst.msk [vmem:[%s1978_s29 + $0x120] sm:$0xff] %vm1297_vm3, %v1269_v8  ;;  %v1238_v11 = vmax.f32 %v1174_v9, 0.0  ;;  %v1270_v12 = vmax.f32 %v1206_v10, 0.0 }
 0x11a   : > { %v860_v13 = vpop.f32.mrb[12].mxu0  ;;  %v988_v14 = vpop.f32.mrb[12].mxu1 }
 0x11b   : > { %1303 = vst.msk [vmem:[%s1978_s29 + $0x28] sm:$0xff] %vm1297_vm3, %v1238_v11  ;;  %1335 = vst.msk [vmem:[%s1978_s29 + $0x128] sm:$0xff] %vm1297_vm3, %v1270_v12  ;;  %v1104_v16 = vmul.f32 %v1960_v15, %v860_v13  ;;  %v1136_v18 = vmul.f32 %v1960_v15, %v988_v14  ;;  %v862_v19 = vpop.f32.mrb[13].mxu0  ;;  %v990_v20 = vpop.f32.mrb[13].mxu1 }
 0x11c   : > { %v863_v21 = vpop.f32.mrb[14].mxu0  ;;  %v991_v22 = vpop.f32.mrb[14].mxu1 }
 0x11d   : > { %v1175_v23 = vadd.f32 %v1965_v17, %v1104_v16  ;;  %v1207_v24 = vadd.f32 %v1965_v17, %v1136_v18  ;;  %v1105_v25 = vmul.f32 %v1960_v15, %v863_v21  ;;  %v1137_v26 = vmul.f32 %v1960_v15, %v991_v22  ;;  %v865_v27 = vpop.f32.mrb[15].mxu0  ;;  %v993_v28 = vpop.f32.mrb[15].mxu1 }
 0x11f   : > { %v1239_v29 = vmax.f32 %v1175_v23, 0.0  ;;  %v1271_v30 = vmax.f32 %v1207_v24, 0.0  ;;  %v1176_v31 = vadd.f32 %v1965_v17, %v1105_v25  ;;  %v1208_v32 = vadd.f32 %v1965_v17, %v1137_v26 }
 0x121   : > { %1304 = vst.msk [vmem:[%s1978_s29 + $0x30] sm:$0xff] %vm1297_vm3, %v1239_v29  ;;  %1336 = vst.msk [vmem:[%s1978_s29 + $0x130] sm:$0xff] %vm1297_vm3, %v1271_v30  ;;  %v1240_v33 = vmax.f32 %v1176_v31, 0.0  ;;  %v1272_v34 = vmax.f32 %v1208_v32, 0.0 }
 0x122   : > { %v868_v35 = vpop.f32.mrb[16].mxu0  ;;  %v996_v36 = vpop.f32.mrb[16].mxu1 }
 0x123   : > { %1305 = vst.msk [vmem:[%s1978_s29 + $0x38] sm:$0xff] %vm1297_vm3, %v1240_v33  ;;  %1337 = vst.msk [vmem:[%s1978_s29 + $0x138] sm:$0xff] %vm1297_vm3, %v1272_v34  ;;  %v1106_v37 = vmul.f32 %v1960_v15, %v868_v35  ;;  %v1138_v38 = vmul.f32 %v1960_v15, %v996_v36  ;;  %v870_v39 = vpop.f32.mrb[17].mxu0  ;;  %v998_v40 = vpop.f32.mrb[17].mxu1 }
 0x124   : > { %v871_v41 = vpop.f32.mrb[18].mxu0  ;;  %v999_v42 = vpop.f32.mrb[18].mxu1 }
 0x125   : > { %v1177_v43 = vadd.f32 %v1965_v17, %v1106_v37  ;;  %v1209_v44 = vadd.f32 %v1965_v17, %v1138_v38  ;;  %v1107_v45 = vmul.f32 %v1960_v15, %v871_v41  ;;  %v1139_v46 = vmul.f32 %v1960_v15, %v999_v42  ;;  %v873_v47 = vpop.f32.mrb[19].mxu0  ;;  %v1001_v48 = vpop.f32.mrb[19].mxu1 }
 0x127   : > { %v1241_v49 = vmax.f32 %v1177_v43, 0.0  ;;  %v1273_v50 = vmax.f32 %v1209_v44, 0.0  ;;  %v1178_v51 = vadd.f32 %v1965_v17, %v1107_v45  ;;  %v1210_v52 = vadd.f32 %v1965_v17, %v1139_v46 }
 0x129   : > { %1306 = vst.msk [vmem:[%s1978_s29 + $0x40] sm:$0xff] %vm1297_vm3, %v1241_v49  ;;  %1338 = vst.msk [vmem:[%s1978_s29 + $0x140] sm:$0xff] %vm1297_vm3, %v1273_v50  ;;  %v1242_v53 = vmax.f32 %v1178_v51, 0.0  ;;  %v1274_v54 = vmax.f32 %v1210_v52, 0.0 }
 0x12a   : > { %v876_v55 = vpop.f32.mrb[20].mxu0  ;;  %v1004_v56 = vpop.f32.mrb[20].mxu1 }
 0x12b   : > { %1307 = vst.msk [vmem:[%s1978_s29 + $0x48] sm:$0xff] %vm1297_vm3, %v1242_v53  ;;  %1339 = vst.msk [vmem:[%s1978_s29 + $0x148] sm:$0xff] %vm1297_vm3, %v1274_v54  ;;  %v1108_v57 = vmul.f32 %v1960_v15, %v876_v55  ;;  %v1140_v58 = vmul.f32 %v1960_v15, %v1004_v56  ;;  %v878_v59 = vpop.f32.mrb[21].mxu0  ;;  %v1006_v60 = vpop.f32.mrb[21].mxu1 }
 0x12c   : > { %v879_v61 = vpop.f32.mrb[22].mxu0  ;;  %v1007_v62 = vpop.f32.mrb[22].mxu1 }
 0x12d   : > { %v1179_v63 = vadd.f32 %v1965_v17, %v1108_v57  ;;  %v1211_v0 = vadd.f32 %v1965_v17, %v1140_v58  ;;  %v1109_v1 = vmul.f32 %v1960_v15, %v879_v61  ;;  %v1141_v2 = vmul.f32 %v1960_v15, %v1007_v62  ;;  %v881_v3 = vpop.f32.mrb[23].mxu0  ;;  %v1009_v4 = vpop.f32.mrb[23].mxu1 }
 0x12f   : > { %v1243_v5 = vmax.f32 %v1179_v63, 0.0  ;;  %v1275_v6 = vmax.f32 %v1211_v0, 0.0  ;;  %v1180_v7 = vadd.f32 %v1965_v17, %v1109_v1  ;;  %v1212_v8 = vadd.f32 %v1965_v17, %v1141_v2 }
 0x131   : > { %1308 = vst.msk [vmem:[%s1978_s29 + $0x50] sm:$0xff] %vm1297_vm3, %v1243_v5  ;;  %1340 = vst.msk [vmem:[%s1978_s29 + $0x150] sm:$0xff] %vm1297_vm3, %v1275_v6  ;;  %v1244_v9 = vmax.f32 %v1180_v7, 0.0  ;;  %v1276_v10 = vmax.f32 %v1212_v8, 0.0 }
 0x132   : > { %v884_v11 = vpop.f32.mrb[24].mxu0  ;;  %v1012_v12 = vpop.f32.mrb[24].mxu1 }
 0x133   : > { %1309 = vst.msk [vmem:[%s1978_s29 + $0x58] sm:$0xff] %vm1297_vm3, %v1244_v9  ;;  %1341 = vst.msk [vmem:[%s1978_s29 + $0x158] sm:$0xff] %vm1297_vm3, %v1276_v10  ;;  %v1110_v13 = vmul.f32 %v1960_v15, %v884_v11  ;;  %v1142_v14 = vmul.f32 %v1960_v15, %v1012_v12  ;;  %v886_v16 = vpop.f32.mrb[25].mxu0  ;;  %v1014_v18 = vpop.f32.mrb[25].mxu1 }
 0x134   : > { %v887_v19 = vpop.f32.mrb[26].mxu0  ;;  %v1015_v20 = vpop.f32.mrb[26].mxu1 }
 0x135   : > { %v1181_v21 = vadd.f32 %v1965_v17, %v1110_v13  ;;  %v1213_v22 = vadd.f32 %v1965_v17, %v1142_v14  ;;  %v1111_v23 = vmul.f32 %v1960_v15, %v887_v19  ;;  %v1143_v24 = vmul.f32 %v1960_v15, %v1015_v20  ;;  %v889_v25 = vpop.f32.mrb[27].mxu0  ;;  %v1017_v26 = vpop.f32.mrb[27].mxu1 }
 0x137   : > { %v1245_v27 = vmax.f32 %v1181_v21, 0.0  ;;  %v1277_v28 = vmax.f32 %v1213_v22, 0.0  ;;  %v1182_v29 = vadd.f32 %v1965_v17, %v1111_v23  ;;  %v1214_v30 = vadd.f32 %v1965_v17, %v1143_v24 }
 0x139   : > { %1310 = vst.msk [vmem:[%s1978_s29 + $0x60] sm:$0xff] %vm1297_vm3, %v1245_v27  ;;  %1342 = vst.msk [vmem:[%s1978_s29 + $0x160] sm:$0xff] %vm1297_vm3, %v1277_v28  ;;  %v1246_v31 = vmax.f32 %v1182_v29, 0.0  ;;  %v1278_v32 = vmax.f32 %v1214_v30, 0.0 }
 0x13a   : > { %v892_v33 = vpop.f32.mrb[28].mxu0  ;;  %v1020_v34 = vpop.f32.mrb[28].mxu1 }
 0x13b   : > { %1311 = vst.msk [vmem:[%s1978_s29 + $0x68] sm:$0xff] %vm1297_vm3, %v1246_v31  ;;  %1343 = vst.msk [vmem:[%s1978_s29 + $0x168] sm:$0xff] %vm1297_vm3, %v1278_v32  ;;  %v1112_v35 = vmul.f32 %v1960_v15, %v892_v33  ;;  %v1144_v36 = vmul.f32 %v1960_v15, %v1020_v34  ;;  %v894_v37 = vpop.f32.mrb[29].mxu0  ;;  %v1022_v38 = vpop.f32.mrb[29].mxu1 }
 0x13c   : > { %v895_v39 = vpop.f32.mrb[30].mxu0  ;;  %v1023_v40 = vpop.f32.mrb[30].mxu1 }
 0x13d   : > { %v1183_v41 = vadd.f32 %v1965_v17, %v1112_v35  ;;  %v1215_v42 = vadd.f32 %v1965_v17, %v1144_v36  ;;  %v1113_v43 = vmul.f32 %v1960_v15, %v895_v39  ;;  %v1145_v44 = vmul.f32 %v1960_v15, %v1023_v40  ;;  %v897_v45 = vpop.f32.mrb[31].mxu0  ;;  %v1025_v46 = vpop.f32.mrb[31].mxu1 }
 0x13f   : > { %v1247_v47 = vmax.f32 %v1183_v41, 0.0  ;;  %v1279_v48 = vmax.f32 %v1215_v42, 0.0  ;;  %v1184_v49 = vadd.f32 %v1965_v17, %v1113_v43  ;;  %v1216_v50 = vadd.f32 %v1965_v17, %v1145_v44 }
 0x141   : > { %1312 = vst.msk [vmem:[%s1978_s29 + $0x70] sm:$0xff] %vm1297_vm3, %v1247_v47  ;;  %1344 = vst.msk [vmem:[%s1978_s29 + $0x170] sm:$0xff] %vm1297_vm3, %v1279_v48  ;;  %v1248_v51 = vmax.f32 %v1184_v49, 0.0  ;;  %v1280_v52 = vmax.f32 %v1216_v50, 0.0 }
 0x142   : > { %v900_v53 = vpop.f32.mrb[32].mxu0  ;;  %v1028_v54 = vpop.f32.mrb[32].mxu1 }
 0x143   : > { %1313 = vst.msk [vmem:[%s1978_s29 + $0x78] sm:$0xff] %vm1297_vm3, %v1248_v51  ;;  %1345 = vst.msk [vmem:[%s1978_s29 + $0x178] sm:$0xff] %vm1297_vm3, %v1280_v52  ;;  %v1114_v55 = vmul.f32 %v1960_v15, %v900_v53  ;;  %v1146_v56 = vmul.f32 %v1960_v15, %v1028_v54  ;;  %v902_v57 = vpop.f32.mrb[33].mxu0  ;;  %v1030_v58 = vpop.f32.mrb[33].mxu1 }
 0x144   : > { %v903_v59 = vpop.f32.mrb[34].mxu0  ;;  %v1031_v60 = vpop.f32.mrb[34].mxu1 }
 0x145   : > { %v1185_v61 = vadd.f32 %v1965_v17, %v1114_v55  ;;  %v1217_v62 = vadd.f32 %v1965_v17, %v1146_v56  ;;  %v1115_v63 = vmul.f32 %v1960_v15, %v903_v59  ;;  %v1147_v0 = vmul.f32 %v1960_v15, %v1031_v60  ;;  %v905_v1 = vpop.f32.mrb[35].mxu0  ;;  %v1033_v2 = vpop.f32.mrb[35].mxu1 }
 0x147   : > { %v1249_v3 = vmax.f32 %v1185_v61, 0.0  ;;  %v1281_v4 = vmax.f32 %v1217_v62, 0.0  ;;  %v1186_v5 = vadd.f32 %v1965_v17, %v1115_v63  ;;  %v1218_v6 = vadd.f32 %v1965_v17, %v1147_v0 }
 0x149   : > { %1314 = vst.msk [vmem:[%s1978_s29 + $0x80] sm:$0xff] %vm1297_vm3, %v1249_v3  ;;  %1346 = vst.msk [vmem:[%s1978_s29 + $0x180] sm:$0xff] %vm1297_vm3, %v1281_v4  ;;  %v1250_v7 = vmax.f32 %v1186_v5, 0.0  ;;  %v1282_v8 = vmax.f32 %v1218_v6, 0.0 }
 0x14a   : > { %v908_v9 = vpop.f32.mrb[36].mxu0  ;;  %v1036_v10 = vpop.f32.mrb[36].mxu1 }
 0x14b   : > { %1315 = vst.msk [vmem:[%s1978_s29 + $0x88] sm:$0xff] %vm1297_vm3, %v1250_v7  ;;  %1347 = vst.msk [vmem:[%s1978_s29 + $0x188] sm:$0xff] %vm1297_vm3, %v1282_v8  ;;  %v1116_v11 = vmul.f32 %v1960_v15, %v908_v9  ;;  %v1148_v12 = vmul.f32 %v1960_v15, %v1036_v10  ;;  %v910_v13 = vpop.f32.mrb[37].mxu0  ;;  %v1038_v14 = vpop.f32.mrb[37].mxu1 }
 0x14c   : > { %v911_v16 = vpop.f32.mrb[38].mxu0  ;;  %v1039_v18 = vpop.f32.mrb[38].mxu1 }
 0x14d   : > { %v1187_v19 = vadd.f32 %v1965_v17, %v1116_v11  ;;  %v1219_v20 = vadd.f32 %v1965_v17, %v1148_v12  ;;  %v1117_v21 = vmul.f32 %v1960_v15, %v911_v16  ;;  %v1149_v22 = vmul.f32 %v1960_v15, %v1039_v18  ;;  %v913_v23 = vpop.f32.mrb[39].mxu0  ;;  %v1041_v24 = vpop.f32.mrb[39].mxu1 }
 0x14f   : > { %v1251_v25 = vmax.f32 %v1187_v19, 0.0  ;;  %v1283_v26 = vmax.f32 %v1219_v20, 0.0  ;;  %v1188_v27 = vadd.f32 %v1965_v17, %v1117_v21  ;;  %v1220_v28 = vadd.f32 %v1965_v17, %v1149_v22 }
 0x151   : > { %1316 = vst.msk [vmem:[%s1978_s29 + $0x90] sm:$0xff] %vm1297_vm3, %v1251_v25  ;;  %1348 = vst.msk [vmem:[%s1978_s29 + $0x190] sm:$0xff] %vm1297_vm3, %v1283_v26  ;;  %v1252_v29 = vmax.f32 %v1188_v27, 0.0  ;;  %v1284_v30 = vmax.f32 %v1220_v28, 0.0 }
 0x152   : > { %v916_v31 = vpop.f32.mrb[40].mxu0  ;;  %v1044_v32 = vpop.f32.mrb[40].mxu1 }
 0x153   : > { %1317 = vst.msk [vmem:[%s1978_s29 + $0x98] sm:$0xff] %vm1297_vm3, %v1252_v29  ;;  %1349 = vst.msk [vmem:[%s1978_s29 + $0x198] sm:$0xff] %vm1297_vm3, %v1284_v30  ;;  %v1118_v33 = vmul.f32 %v1960_v15, %v916_v31  ;;  %v1150_v34 = vmul.f32 %v1960_v15, %v1044_v32  ;;  %v918_v35 = vpop.f32.mrb[41].mxu0  ;;  %v1046_v36 = vpop.f32.mrb[41].mxu1 }
 0x154   : > { %v919_v37 = vpop.f32.mrb[42].mxu0  ;;  %v1047_v38 = vpop.f32.mrb[42].mxu1 }
 0x155   : > { %v1189_v39 = vadd.f32 %v1965_v17, %v1118_v33  ;;  %v1221_v40 = vadd.f32 %v1965_v17, %v1150_v34  ;;  %v1119_v41 = vmul.f32 %v1960_v15, %v919_v37  ;;  %v1151_v42 = vmul.f32 %v1960_v15, %v1047_v38  ;;  %v921_v43 = vpop.f32.mrb[43].mxu0  ;;  %v1049_v44 = vpop.f32.mrb[43].mxu1 }
 0x157   : > { %v1253_v45 = vmax.f32 %v1189_v39, 0.0  ;;  %v1285_v46 = vmax.f32 %v1221_v40, 0.0  ;;  %v1190_v47 = vadd.f32 %v1965_v17, %v1119_v41  ;;  %v1222_v48 = vadd.f32 %v1965_v17, %v1151_v42 }
 0x159   : > { %1318 = vst.msk [vmem:[%s1978_s29 + $0xa0] sm:$0xff] %vm1297_vm3, %v1253_v45  ;;  %1350 = vst.msk [vmem:[%s1978_s29 + $0x1a0] sm:$0xff] %vm1297_vm3, %v1285_v46  ;;  %v1254_v49 = vmax.f32 %v1190_v47, 0.0  ;;  %v1286_v50 = vmax.f32 %v1222_v48, 0.0 }
 0x15a   : > { %v924_v51 = vpop.f32.mrb[44].mxu0  ;;  %v1052_v52 = vpop.f32.mrb[44].mxu1 }
 0x15b   : > { %1319 = vst.msk [vmem:[%s1978_s29 + $0xa8] sm:$0xff] %vm1297_vm3, %v1254_v49  ;;  %1351 = vst.msk [vmem:[%s1978_s29 + $0x1a8] sm:$0xff] %vm1297_vm3, %v1286_v50  ;;  %v1120_v53 = vmul.f32 %v1960_v15, %v924_v51  ;;  %v1152_v54 = vmul.f32 %v1960_v15, %v1052_v52  ;;  %v926_v55 = vpop.f32.mrb[45].mxu0  ;;  %v1054_v56 = vpop.f32.mrb[45].mxu1 }
 0x15c   : > { %v927_v57 = vpop.f32.mrb[46].mxu0  ;;  %v1055_v58 = vpop.f32.mrb[46].mxu1 }
 0x15d   : > { %v1191_v59 = vadd.f32 %v1965_v17, %v1120_v53  ;;  %v1223_v60 = vadd.f32 %v1965_v17, %v1152_v54  ;;  %v1121_v61 = vmul.f32 %v1960_v15, %v927_v57  ;;  %v1153_v62 = vmul.f32 %v1960_v15, %v1055_v58  ;;  %v929_v63 = vpop.f32.mrb[47].mxu0  ;;  %v1057_v0 = vpop.f32.mrb[47].mxu1 }
 0x15f   : > { %v1255_v1 = vmax.f32 %v1191_v59, 0.0  ;;  %v1287_v2 = vmax.f32 %v1223_v60, 0.0  ;;  %v1192_v3 = vadd.f32 %v1965_v17, %v1121_v61  ;;  %v1224_v4 = vadd.f32 %v1965_v17, %v1153_v62 }
 0x161   : > { %1320 = vst.msk [vmem:[%s1978_s29 + $0xb0] sm:$0xff] %vm1297_vm3, %v1255_v1  ;;  %1352 = vst.msk [vmem:[%s1978_s29 + $0x1b0] sm:$0xff] %vm1297_vm3, %v1287_v2  ;;  %v1256_v5 = vmax.f32 %v1192_v3, 0.0  ;;  %v1288_v6 = vmax.f32 %v1224_v4, 0.0 }
 0x162   : > { %v932_v7 = vpop.f32.mrb[48].mxu0  ;;  %v1060_v8 = vpop.f32.mrb[48].mxu1 }
 0x163   : > { %1321 = vst.msk [vmem:[%s1978_s29 + $0xb8] sm:$0xff] %vm1297_vm3, %v1256_v5  ;;  %1353 = vst.msk [vmem:[%s1978_s29 + $0x1b8] sm:$0xff] %vm1297_vm3, %v1288_v6  ;;  %v1122_v9 = vmul.f32 %v1960_v15, %v932_v7  ;;  %v1154_v10 = vmul.f32 %v1960_v15, %v1060_v8  ;;  %v934_v11 = vpop.f32.mrb[49].mxu0  ;;  %v1062_v12 = vpop.f32.mrb[49].mxu1 }
 0x164   : > { %v935_v13 = vpop.f32.mrb[50].mxu0  ;;  %v1063_v14 = vpop.f32.mrb[50].mxu1 }
 0x165   : > { %v1193_v16 = vadd.f32 %v1965_v17, %v1122_v9  ;;  %v1225_v18 = vadd.f32 %v1965_v17, %v1154_v10  ;;  %v1123_v19 = vmul.f32 %v1960_v15, %v935_v13  ;;  %v1155_v20 = vmul.f32 %v1960_v15, %v1063_v14  ;;  %v937_v21 = vpop.f32.mrb[51].mxu0  ;;  %v1065_v22 = vpop.f32.mrb[51].mxu1 }
 0x167   : > { %v1257_v23 = vmax.f32 %v1193_v16, 0.0  ;;  %v1289_v24 = vmax.f32 %v1225_v18, 0.0  ;;  %v1194_v25 = vadd.f32 %v1965_v17, %v1123_v19  ;;  %v1226_v26 = vadd.f32 %v1965_v17, %v1155_v20 }
 0x169   : > { %1322 = vst.msk [vmem:[%s1978_s29 + $0xc0] sm:$0xff] %vm1297_vm3, %v1257_v23  ;;  %1354 = vst.msk [vmem:[%s1978_s29 + $0x1c0] sm:$0xff] %vm1297_vm3, %v1289_v24  ;;  %v1258_v27 = vmax.f32 %v1194_v25, 0.0  ;;  %v1290_v28 = vmax.f32 %v1226_v26, 0.0 }
 0x16a   : > { %v940_v29 = vpop.f32.mrb[52].mxu0  ;;  %v1068_v30 = vpop.f32.mrb[52].mxu1 }
 0x16b   : > { %1323 = vst.msk [vmem:[%s1978_s29 + $0xc8] sm:$0xff] %vm1297_vm3, %v1258_v27  ;;  %1355 = vst.msk [vmem:[%s1978_s29 + $0x1c8] sm:$0xff] %vm1297_vm3, %v1290_v28  ;;  %v1124_v31 = vmul.f32 %v1960_v15, %v940_v29  ;;  %v1156_v32 = vmul.f32 %v1960_v15, %v1068_v30  ;;  %v942_v33 = vpop.f32.mrb[53].mxu0  ;;  %v1070_v34 = vpop.f32.mrb[53].mxu1 }
 0x16c   : > { %v943_v35 = vpop.f32.mrb[54].mxu0  ;;  %v1071_v36 = vpop.f32.mrb[54].mxu1 }
 0x16d   : > { %v1195_v37 = vadd.f32 %v1965_v17, %v1124_v31  ;;  %v1227_v38 = vadd.f32 %v1965_v17, %v1156_v32  ;;  %v1125_v39 = vmul.f32 %v1960_v15, %v943_v35  ;;  %v1157_v40 = vmul.f32 %v1960_v15, %v1071_v36  ;;  %v945_v41 = vpop.f32.mrb[55].mxu0  ;;  %v1073_v42 = vpop.f32.mrb[55].mxu1 }
 0x16f   : > { %v1259_v43 = vmax.f32 %v1195_v37, 0.0  ;;  %v1291_v44 = vmax.f32 %v1227_v38, 0.0  ;;  %v1196_v45 = vadd.f32 %v1965_v17, %v1125_v39  ;;  %v1228_v46 = vadd.f32 %v1965_v17, %v1157_v40 }
 0x171   : > { %1324 = vst.msk [vmem:[%s1978_s29 + $0xd0] sm:$0xff] %vm1297_vm3, %v1259_v43  ;;  %1356 = vst.msk [vmem:[%s1978_s29 + $0x1d0] sm:$0xff] %vm1297_vm3, %v1291_v44  ;;  %v1260_v47 = vmax.f32 %v1196_v45, 0.0  ;;  %v1292_v48 = vmax.f32 %v1228_v46, 0.0 }
 0x172   : > { %v948_v49 = vpop.f32.mrb[56].mxu0  ;;  %v1076_v50 = vpop.f32.mrb[56].mxu1 }
 0x173   : > { %1325 = vst.msk [vmem:[%s1978_s29 + $0xd8] sm:$0xff] %vm1297_vm3, %v1260_v47  ;;  %1357 = vst.msk [vmem:[%s1978_s29 + $0x1d8] sm:$0xff] %vm1297_vm3, %v1292_v48  ;;  %v1126_v51 = vmul.f32 %v1960_v15, %v948_v49  ;;  %v1158_v52 = vmul.f32 %v1960_v15, %v1076_v50  ;;  %v950_v53 = vpop.f32.mrb[57].mxu0  ;;  %v1078_v54 = vpop.f32.mrb[57].mxu1 }
 0x174   : > { %v951_v55 = vpop.f32.mrb[58].mxu0  ;;  %v1079_v56 = vpop.f32.mrb[58].mxu1 }
 0x175   : > { %v1197_v57 = vadd.f32 %v1965_v17, %v1126_v51  ;;  %v1229_v58 = vadd.f32 %v1965_v17, %v1158_v52  ;;  %v1127_v59 = vmul.f32 %v1960_v15, %v951_v55  ;;  %v1159_v60 = vmul.f32 %v1960_v15, %v1079_v56  ;;  %v953_v61 = vpop.f32.mrb[59].mxu0  ;;  %v1081_v62 = vpop.f32.mrb[59].mxu1 }
 0x177   : > { %v1261_v63 = vmax.f32 %v1197_v57, 0.0  ;;  %v1293_v0 = vmax.f32 %v1229_v58, 0.0  ;;  %v1198_v1 = vadd.f32 %v1965_v17, %v1127_v59  ;;  %v1230_v2 = vadd.f32 %v1965_v17, %v1159_v60 }
 0x179   : > { %1326 = vst.msk [vmem:[%s1978_s29 + $0xe0] sm:$0xff] %vm1297_vm3, %v1261_v63  ;;  %1358 = vst.msk [vmem:[%s1978_s29 + $0x1e0] sm:$0xff] %vm1297_vm3, %v1293_v0  ;;  %v1262_v3 = vmax.f32 %v1198_v1, 0.0  ;;  %v1294_v4 = vmax.f32 %v1230_v2, 0.0 }
 0x17a   : > { %v956_v5 = vpop.f32.mrb[60].mxu0  ;;  %v1084_v6 = vpop.f32.mrb[60].mxu1 }
 0x17b   : > { %1327 = vst.msk [vmem:[%s1978_s29 + $0xe8] sm:$0xff] %vm1297_vm3, %v1262_v3  ;;  %1359 = vst.msk [vmem:[%s1978_s29 + $0x1e8] sm:$0xff] %vm1297_vm3, %v1294_v4  ;;  %v1128_v7 = vmul.f32 %v1960_v15, %v956_v5  ;;  %v1160_v8 = vmul.f32 %v1960_v15, %v1084_v6  ;;  %v958_v9 = vpop.f32.mrb[61].mxu0  ;;  %v1086_v10 = vpop.f32.mrb[61].mxu1 }
 0x17c   : > { %v959_v11 = vpop.f32.mrb[62].mxu0  ;;  %v1087_v12 = vpop.f32.mrb[62].mxu1 }
 0x17d   : > { %v1199_v13 = vadd.f32 %v1965_v17, %v1128_v7  ;;  %v1231_v14 = vadd.f32 %v1965_v17, %v1160_v8  ;;  %v1129_v16 = vmul.f32 %v1960_v15, %v959_v11  ;;  %v1161_v18 = vmul.f32 %v1960_v15, %v1087_v12  ;;  %v961_v19 = vpop.f32.mrb[63].mxu0  ;;  %v1089_v20 = vpop.f32.mrb[63].mxu1 }
 0x17f   : > { %v1263_v21 = vmax.f32 %v1199_v13, 0.0  ;;  %v1295_v22 = vmax.f32 %v1231_v14, 0.0  ;;  %v1200_v23 = vadd.f32 %v1965_v17, %v1129_v16  ;;  %v1232_v24 = vadd.f32 %v1965_v17, %v1161_v18 }
 0x181   : > { %1328 = vst.msk [vmem:[%s1978_s29 + $0xf0] sm:$0xff] %vm1297_vm3, %v1263_v21  ;;  %1360 = vst.msk [vmem:[%s1978_s29 + $0x1f0] sm:$0xff] %vm1297_vm3, %v1295_v22  ;;  %v1264_v25 = vmax.f32 %v1200_v23, 0.0  ;;  %v1296_v26 = vmax.f32 %v1232_v24, 0.0 }
 0x183   : > { %1329 = vst.msk [vmem:[%s1978_s29 + $0xf8] sm:$0xff] %vm1297_vm3, %v1264_v25  ;;  %1361 = vst.msk [vmem:[%s1978_s29 + $0x1f8] sm:$0xff] %vm1297_vm3, %v1296_v26 }
 0x184 PF: > { %s14_s17 = sadd.s32 1, %s1774_s17   ;;  %s2244_s15 = smov %s1770_s16 }
 0x185   : > { %p11_p5 = scmp.ge.s32.totalorder %s14_s17, 18   ;;  %s2245_s16 = smov %s2247_s18 }
 0x187   :  { %13 = sbr.rel (!%p11_p5) target bundleno = 2 (0x2), region = 75 }

</bundles_post_ra>
